<compile_context>
chip_gen: v7x
topology: tpu7x:2x2x1
jax: 0.10.0
libtpu: 0.0.40
codegen_flags: <defaults>
</compile_context>

<pallas_src>
import jax
import jax.numpy as jnp
import numpy as np
from jax.experimental import pallas as pl
from jax.experimental.pallas import tpu as pltpu

LEAKY_SLOPE = 0.1   # nn.LeakyReLU(0.1)
LN_EPS = 1e-5       # nn.LayerNorm default eps
BN_EPS = 1e-5       # nn.BatchNorm1d default eps
LANES = 128


# ----------------------------------------------------------------------------
# Parameter slab layout (all offsets static)
# ----------------------------------------------------------------------------
def _build_layout(B, N):
    """name -> (row_start, n_rows, col_start, n_cols) inside the (R, 128) slab."""
    BN = B * N
    layout = {}
    row = 0

    def add(name, nr, nc):
        nonlocal row
        if nr > 1:                       # keep multi-row (MXU / tile) blocks 8-aligned
            row = ((row + 7) // 8) * 8
        layout[name] = (row, nr, 0, nc)
        row += nr

    # MXU weights (lane 0, sublane-aligned starts)
    add("w1", 3, 6); add("w2", 6, 12); add("w3", 12, 24)
    add("wt", 24, 12); add("wp", 24, 12); add("wg", 24, 12)
    add("ww", 12, 24); add("w4", 24, 12)
    # LayerNorm affine params, pre-tiled over batch -> (B*N, C)
    add("g1", BN, 6); add("be1", BN, 6); add("g2", BN, 12); add("be2", BN, 12)
    # 1-row vectors packed densely (one row each, lane 0)
    for name, nc in (("b1", 6), ("b2", 12), ("b3", 24), ("bt", 12), ("bp", 12),
                     ("bg", 12), ("bw", 24), ("bng", 24), ("bnb", 24),
                     ("b4", 12), ("w5r", 12), ("b5", 1)):
        add(name, 1, nc)
    total_rows = ((row + 7) // 8) * 8
    return layout, total_rows


def pack_params(params, B, N):
    """Pack the 24 original parameter arrays into one (R, 128) f32 slab.

    Call ONCE at parameter-creation time (host-side numpy); this is deliberately
    kept out of the jitted per-call path.
    """
    (w1, b1, g1, be1, w2, b2, g2, be2, w3, b3,
     wt, bt, wp, bp, wg, bg, ww, bw, bng, bnb, w4, b4, w5, b5) = params
    layout, total_rows = _build_layout(B, N)
    named = {
        "w1": w1, "w2": w2, "w3": w3, "wt": wt, "wp": wp, "wg": wg,
        "ww": ww, "w4": w4,
        "g1": np.tile(np.asarray(g1), (B, 1)),  "be1": np.tile(np.asarray(be1), (B, 1)),
        "g2": np.tile(np.asarray(g2), (B, 1)),  "be2": np.tile(np.asarray(be2), (B, 1)),
        "b1": b1, "b2": b2, "b3": b3, "bt": bt, "bp": bp, "bg": bg,
        "bw": bw, "bng": bng, "bnb": bnb, "b4": b4,
        "w5r": np.asarray(w5).reshape(1, -1), "b5": b5,
    }
    slab = np.zeros((total_rows, LANES), np.float32)
    for name, arr in named.items():
        r0, nr, c0, nc = layout[name]
        slab[r0:r0 + nr, c0:c0 + nc] = np.asarray(arr, np.float32)
    return jnp.asarray(slab), layout


# ----------------------------------------------------------------------------
# Kernel
# ----------------------------------------------------------------------------
def make_kernel(B, N, out_rows, layout):
    BN = B * N

    def kernel(x_ref, p_ref, out_ref):

        def wref(name):
            r0, nr, c0, nc = layout[name]
            return p_ref[r0:r0 + nr, c0:c0 + nc]      # ref slice: load at use site

        def leaky(v):
            return jnp.where(v >= 0, v, LEAKY_SLOPE * v)

        def lin(v, wname, bname):
            # Small matmuls go to the otherwise-idle MXU (no serial FMA chains).
            return jnp.dot(v, wref(wname),
                           preferred_element_type=jnp.float32) + wref(bname)

        def layernorm(h, gname, bename):
            # nn.LayerNorm((N, C)): per-batch-sample stats over (N, C).
            # One fused [h | h*h] reduction per batch; per-batch (mu, rsqrt)
            # applied to the full (BN, C) tile via sublane selects (no concats).
            C = h.shape[1]
            inv_n = 1.0 / (N * C)
            hh = jnp.concatenate([h, h * h], axis=1)              # (BN, 2C) lane concat
            rows = jax.lax.broadcasted_iota(jnp.int32, (BN, 1), 0)
            mu_rows = jnp.zeros((BN, 1), jnp.float32)
            rs_rows = jnp.zeros((BN, 1), jnp.float32)
            for b_ in range(B):                                    # B unrolled statically
                red = jnp.sum(hh[b_ * N:(b_ + 1) * N, :], axis=0, keepdims=True)
                s = jnp.sum(red[:, 0:C])
                ss = jnp.sum(red[:, C:2 * C])
                mu = s * inv_n
                var = jnp.maximum(ss * inv_n - mu * mu, 0.0)
                rs = jax.lax.rsqrt(var + LN_EPS)
                in_b = jnp.logical_and(rows >= b_ * N, rows < (b_ + 1) * N)
                mu_rows = jnp.where(in_b, mu, mu_rows)
                rs_rows = jnp.where(in_b, rs, rs_rows)
            return (h - mu_rows) * (rs_rows * wref(gname)) + wref(bename)

        x = x_ref[...]                                             # (BN, 3)

        # ---- encoder (channels-last 2D layout throughout) ----
        h = leaky(layernorm(lin(x, "w1", "b1"), "g1", "be1"))      # (BN, 6)
        h = leaky(layernorm(lin(h, "w2", "b2"), "g2", "be2"))      # (BN, 12)
        h2 = lin(h, "w3", "b3")                                    # (BN, 24)

        # ---- Attention(24, generate=False), out_channels = 12 ----
        th = lin(h2, "wt", "bt")                                   # (BN, 12)
        ph = lin(h2, "wp", "bp")                                   # (BN, 12)
        gg = lin(h2, "wg", "bg")                                   # (BN, 12)

        # Per-batch products fused into one block-diagonal matmul pair:
        # f[i, j] = <theta_i, phi_j> kept only when i, j are in the same batch.
        f = pl.dot(th, ph, trans_b=True)                           # (BN, BN)
        ri = jax.lax.broadcasted_iota(jnp.int32, (BN, BN), 0)
        ci = jax.lax.broadcasted_iota(jnp.int32, (BN, BN), 1)
        same = jnp.zeros((BN, BN), jnp.bool_)
        for b_ in range(B):
            in_r = jnp.logical_and(ri >= b_ * N, ri < (b_ + 1) * N)
            in_c = jnp.logical_and(ci >= b_ * N, ci < (b_ + 1) * N)
            same = jnp.logical_or(same, jnp.logical_and(in_r, in_c))
        f = jnp.where(same, f * (1.0 / N), 0.0)
        y = jnp.dot(f, gg, preferred_element_type=jnp.float32)     # (BN, 12)
        wy = lin(y, "ww", "bw")                                    # (BN, 24), one W matmul

        # BatchNorm1d(24), train mode: per-channel stats over all B*N positions.
        inv_bn = 1.0 / BN
        mu = jnp.sum(wy, axis=0, keepdims=True) * inv_bn
        var = jnp.maximum(jnp.sum(wy * wy, axis=0, keepdims=True) * inv_bn - mu * mu, 0.0)
        scale = jax.lax.rsqrt(var + BN_EPS) * wref("bng")
        shift = wref("bnb") - mu * scale
        wy = wy * scale + shift                                    # (BN, 24)

        # MaxPool1d(kernel_size=N) per batch, placed into an 8-row padded tile
        # via selects (rows >= B are don't-care and dropped in the wrapper).
        rows = jax.lax.broadcasted_iota(jnp.int32, (out_rows, 1), 0)
        pooled = jnp.zeros((out_rows, 24), jnp.float32)
        for b_ in range(B):
            pb = jnp.max(wy[b_ * N:(b_ + 1) * N, :], axis=0, keepdims=True)
            pooled = jnp.where(rows == b_, pb, pooled)

        # ---- decoder ----
        h4 = leaky(lin(pooled, "w4", "b4"))                        # (out_rows, 12)
        out = jnp.sum(h4 * wref("w5r"), axis=-1, keepdims=True) + wref("b5")
        out_ref[...] = jnp.broadcast_to(out, out_ref.shape)        # full (8,128) store

    return kernel


# ----------------------------------------------------------------------------
# Wrappers
# ----------------------------------------------------------------------------
def relation_discriminator_stacked(x_stack, slab):
    """Forward for a stack of independent discriminator instances.

    x_stack: (I, B, N, 3); slab: pre-packed parameter slab from pack_params.
    Returns (I, B) scores. The instance axis is a "parallel" grid axis
    (sharded across TensorCores on v7x).
    """
    I, B, N, Fdim = x_stack.shape
    BN = B * N
    if I > 1 and BN % 8 != 0:
        raise ValueError("batch*num_elements must be a multiple of 8 when stacking instances")
    layout, total_rows = _build_layout(B, N)
    if tuple(slab.shape) != (total_rows, LANES):
        raise ValueError("parameter slab does not match the (B, N) layout; re-run pack_params")
    out_rows = max(8, ((B + 7) // 8) * 8)

    x2d = x_stack.reshape(I * BN, Fdim).astype(jnp.float32)
    kernel = make_kernel(B, N, out_rows, layout)

    flops = 2 * I * (BN * 3 * 6 + BN * 6 * 12 + BN * 12 * 24 + 3 * BN * 24 * 12
                     + 2 * BN * BN * 12 + BN * 12 * 24
                     + out_rows * 24 * 12 + out_rows * 12)
    bytes_accessed = int(I * BN * Fdim * 4 + total_rows * LANES * 4
                         + I * out_rows * LANES * 4)

    out = pl.pallas_call(
        kernel,
        out_shape=jax.ShapeDtypeStruct((I * out_rows, LANES), jnp.float32),
        grid=(I,),
        in_specs=[pl.BlockSpec((BN, Fdim), lambda i: (i, 0)),
                  pl.BlockSpec((total_rows, LANES), lambda i: (0, 0))],
        out_specs=pl.BlockSpec((out_rows, LANES), lambda i: (i, 0)),
        compiler_params=pltpu.CompilerParams(dimension_semantics=("parallel",)),
        cost_estimate=pl.CostEstimate(flops=flops,
                                      transcendentals=I * (2 * B + 1),
                                      bytes_accessed=bytes_accessed),
    )(x2d, slab)
    return out.reshape(I, out_rows, LANES)[:, :B, 0]


def relation_discriminator(x_in, slab):
    """Single-instance forward: x_in (B, N, 3) -> (B,)  (matches x.view(-1))."""
    return relation_discriminator_stacked(x_in[None], slab)[0]


# ----------------------------------------------------------------------------
# Pure-JAX reference (independent formulation: two-pass stats, batched einsums)
# ----------------------------------------------------------------------------
def _forward_ref(x, p):
    (w1, b1, g1, be1, w2, b2, g2, be2, w3, b3,
     wt, bt, wp, bp, wg, bg, ww, bw, bng, bnb, w4, b4, w5, b5) = p
    B, N, _ = x.shape

    def leaky(v):
        return jnp.where(v >= 0, v, LEAKY_SLOPE * v)

    def lin(v2d, w, b):
        return jnp.dot(v2d, w, preferred_element_type=jnp.float32) + b

    def layernorm(v3d, g, b):
        mu = jnp.mean(v3d, axis=(1, 2), keepdims=True)
        var = jnp.mean((v3d - mu) ** 2, axis=(1, 2), keepdims=True)
        return (v3d - mu) * jax.lax.rsqrt(var + LN_EPS) * g + b

    h = lin(x.reshape(B * N, 3), w1, b1).reshape(B, N, 6)
    h = leaky(layernorm(h, g1, be1))
    h = lin(h.reshape(B * N, 6), w2, b2).reshape(B, N, 12)
    h = leaky(layernorm(h, g2, be2))
    h2 = lin(h.reshape(B * N, 12), w3, b3)                      # (B*N, 24)

    theta = lin(h2, wt, bt).reshape(B, N, 12)
    phi = lin(h2, wp, bp).reshape(B, N, 12)
    g_x = lin(h2, wg, bg).reshape(B, N, 12)
    f = jnp.einsum('bic,bjc->bij', theta, phi,
                   preferred_element_type=jnp.float32) * (1.0 / N)
    y = jnp.einsum('bij,bjc->bic', f, g_x,
                   preferred_element_type=jnp.float32)
    wy = lin(y.reshape(B * N, 12), ww, bw)                      # (B*N, 24)
    mu = jnp.mean(wy, axis=0, keepdims=True)
    var = jnp.mean((wy - mu) ** 2, axis=0, keepdims=True)
    wy = (wy - mu) * jax.lax.rsqrt(var + BN_EPS) * bng + bnb

    pooled = jnp.max(wy.reshape(B, N, 24), axis=1)              # (B, 24)
    h4 = leaky(lin(pooled, w4, b4))
    return lin(h4, w5, b5)                                      # (B, 1)


# ----------------------------------------------------------------------------
# Deterministic synthetic parameters (Linear / 1x1-conv weights stored (in,out))
# ----------------------------------------------------------------------------
def init_params(key, num_elements):
    ks = jax.random.split(key, 24)

    def nrm(k, shape, scale=0.3):
        return scale * jax.random.normal(k, shape, jnp.float32)

    N = num_elements
    return [
        nrm(ks[0], (3, 6)),            nrm(ks[1], (1, 6), 0.1),      # encoder_fc1
        1.0 + nrm(ks[2], (N, 6), 0.05), nrm(ks[3], (N, 6), 0.05),    # encoder_bn1 (LayerNorm)
        nrm(ks[4], (6, 12)),           nrm(ks[5], (1, 12), 0.1),     # encoder_fc2
        1.0 + nrm(ks[6], (N, 12), 0.05), nrm(ks[7], (N, 12), 0.05),  # encoder_bn2 (LayerNorm)
        nrm(ks[8], (12, 24)),          nrm(ks[9], (1, 24), 0.1),     # encoder_fc3
        nrm(ks[10], (24, 12), 0.2),    nrm(ks[11], (1, 12), 0.1),    # attention.theta
        nrm(ks[12], (24, 12), 0.2),    nrm(ks[13], (1, 12), 0.1),    # attention.phi
        nrm(ks[14], (24, 12), 0.2),    nrm(ks[15], (1, 12), 0.1),    # attention.g
        nrm(ks[16], (12, 24), 0.2),    nrm(ks[17], (1, 24), 0.1),    # attention.W[0]
        1.0 + nrm(ks[18], (1, 24), 0.05), nrm(ks[19], (1, 24), 0.05),# attention.W[1] BN
        nrm(ks[20], (24, 12)),         nrm(ks[21], (1, 12), 0.1),    # decoder_fc4
        nrm(ks[22], (12, 1)),          nrm(ks[23], (1, 1), 0.1),     # decoder_fc5
    ]


if __name__ == "__main__":
    batch_size, num_elements = 2, 8
    geo_num, cls_num = 4, 5   # unused by forward (encoder_fc1 fixes input features to 3)

    key = jax.random.PRNGKey(0)
    kx, kp = jax.random.split(key)
    x_in = jax.random.normal(kx, (batch_size, num_elements, 3), jnp.float32)
    params = init_params(kp, num_elements)

    # Parameters are packed exactly once, outside the jitted per-call path.
    slab, _ = pack_params(params, batch_size, num_elements)

    fwd = jax.jit(relation_discriminator)
    out = jax.block_until_ready(fwd(x_in, slab))
    assert out.shape == (batch_size,)
    ref = np.asarray(_forward_ref(x_in, params)).reshape(-1)
    np.testing.assert_allclose(np.asarray(out), ref, rtol=2e-2, atol=2e-2)

    # Many independent evaluations share one pallas_call through the parallel
    # instance grid axis (both TensorCores on v7x, amortized overhead elsewhere).
    num_inst = 4
    xs = jax.random.normal(jax.random.PRNGKey(1),
                           (num_inst, batch_size, num_elements, 3), jnp.float32)
    fwd_many = jax.jit(relation_discriminator_stacked)
    outs = jax.block_until_ready(fwd_many(xs, slab))
    refs = np.stack([np.asarray(_forward_ref(xs[i], params)).reshape(-1)
                     for i in range(num_inst)])
    np.testing.assert_allclose(np.asarray(outs), refs, rtol=2e-2, atol=2e-2)

    print("KERNEL_OK")
</pallas_src>

<mosaic_0001>
module attributes {stable_mosaic.version = 11 : i64} {
  func.func @kernel(%arg0: i32, %arg1: memref<16x3xf32, #tpu.memory_space<vmem>>, %arg2: memref<224x128xf32, #tpu.memory_space<vmem>>, %arg3: memref<8x128xf32, #tpu.memory_space<vmem>>) attributes {dimension_semantics = [#tpu.dimension_semantics<parallel>], iteration_bounds = array<i64: 1>, scalar_prefetch = 0 : i64, scratch_operands = 0 : i64, tpu.core_type = #tpu.core_type<tc>, window_params = [{transform_indices = @transform_0, window_bounds = array<i64: 16, 3>}, {pipeline_mode = #tpu.pipeline_mode<synchronous>, transform_indices = @transform_1, window_bounds = array<i64: 224, 128>}, {transform_indices = @transform_2, window_bounds = array<i64: 8, 128>}]} {
    %c0 = arith.constant 0 : index
    %c0_0 = arith.constant 0 : index
    %0 = vector.load %arg1[%c0, %c0_0] : memref<16x3xf32, #tpu.memory_space<vmem>>, vector<16x3xf32>
    %c0_1 = arith.constant 0 : index
    %c0_2 = arith.constant 0 : index
    %1 = vector.load %arg2[%c0_1, %c0_2] : memref<224x128xf32, #tpu.memory_space<vmem>>, vector<3x6xf32>
    %cst = arith.constant dense<0.000000e+00> : vector<16x6xf32>
    %2 = tpu.matmul %0, %1, %cst {dimension_numbers = #tpu.dot_dimension_numbers<[1], [0], [0], [1], [0, 0, 1, 1], [], []>} : vector<16x3xf32>, vector<3x6xf32>, vector<16x6xf32> -> vector<16x6xf32>
    %c208 = arith.constant 208 : index
    %c0_3 = arith.constant 0 : index
    %3 = vector.load %arg2[%c208, %c0_3] : memref<224x128xf32, #tpu.memory_space<vmem>>, vector<1x6xf32>
    %4 = vector.broadcast %3 : vector<1x6xf32> to vector<16x6xf32>
    %5 = arith.addf %2, %4 : vector<16x6xf32>
    %6 = arith.mulf %5, %5 : vector<16x6xf32>
    %7 = tpu.concatenate %5, %6 in 1 : vector<16x6xf32>, vector<16x6xf32> -> vector<16x12xf32>
    %8 = tpu.iota {dimensions = array<i32: 0>} : vector<16x1xi32>
    %cst_4 = arith.constant 0.000000e+00 : f32
    %9 = vector.broadcast %cst_4 : f32 to vector<16x1xf32>
    %cst_5 = arith.constant 0.000000e+00 : f32
    %10 = vector.broadcast %cst_5 : f32 to vector<16x1xf32>
    %11 = vector.extract_strided_slice %7 {offsets = [0, 0], sizes = [8, 12], strides = [1, 1]} : vector<16x12xf32> to vector<8x12xf32>
    %cst_6 = arith.constant dense<0.000000e+00> : vector<12xf32>
    %12 = vector.multi_reduction <add>, %11, %cst_6 [0] : vector<8x12xf32> to vector<12xf32>
    %13 = vector.shape_cast %12 : vector<12xf32> to vector<1x12xf32>
    %14 = vector.extract_strided_slice %13 {offsets = [0, 0], sizes = [1, 6], strides = [1, 1]} : vector<1x12xf32> to vector<1x6xf32>
    %15 = vector.shape_cast %14 : vector<1x6xf32> to vector<1x1x6xf32>
    %cst_7 = arith.constant dense<0.000000e+00> : vector<1xf32>
    %16 = vector.multi_reduction <add>, %15, %cst_7 [1, 2] : vector<1x1x6xf32> to vector<1xf32>
    %17 = vector.shape_cast %16 : vector<1xf32> to vector<1x1x1xf32>
    %18 = vector.extract %17[0, 0, 0] : f32 from vector<1x1x1xf32>
    %19 = vector.extract_strided_slice %13 {offsets = [0, 6], sizes = [1, 6], strides = [1, 1]} : vector<1x12xf32> to vector<1x6xf32>
    %20 = vector.shape_cast %19 : vector<1x6xf32> to vector<1x1x6xf32>
    %cst_8 = arith.constant dense<0.000000e+00> : vector<1xf32>
    %21 = vector.multi_reduction <add>, %20, %cst_8 [1, 2] : vector<1x1x6xf32> to vector<1xf32>
    %22 = vector.shape_cast %21 : vector<1xf32> to vector<1x1x1xf32>
    %23 = vector.extract %22[0, 0, 0] : f32 from vector<1x1x1xf32>
    %cst_9 = arith.constant 0.020833334 : f32
    %24 = arith.mulf %18, %cst_9 : f32
    %cst_10 = arith.constant 0.020833334 : f32
    %25 = arith.mulf %23, %cst_10 : f32
    %26 = arith.mulf %24, %24 : f32
    %27 = arith.subf %25, %26 : f32
    %cst_11 = arith.constant 0.000000e+00 : f32
    %28 = arith.maximumf %27, %cst_11 : f32
    %cst_12 = arith.constant 9.99999974E-6 : f32
    %29 = arith.addf %28, %cst_12 : f32
    %30 = math.rsqrt %29 : f32
    %c0_i32 = arith.constant 0 : i32
    %31 = vector.broadcast %c0_i32 : i32 to vector<16x1xi32>
    %32 = arith.cmpi sge, %8, %31 : vector<16x1xi32>
    %c8_i32 = arith.constant 8 : i32
    %33 = vector.broadcast %c8_i32 : i32 to vector<16x1xi32>
    %34 = arith.cmpi slt, %8, %33 : vector<16x1xi32>
    %35 = arith.andi %32, %34 : vector<16x1xi1>
    %36 = vector.broadcast %24 : f32 to vector<16x1xf32>
    %37 = arith.select %35, %36, %9 : vector<16x1xi1>, vector<16x1xf32>
    %38 = vector.broadcast %30 : f32 to vector<16x1xf32>
    %39 = arith.select %35, %38, %10 : vector<16x1xi1>, vector<16x1xf32>
    %40 = vector.extract_strided_slice %7 {offsets = [8, 0], sizes = [8, 12], strides = [1, 1]} : vector<16x12xf32> to vector<8x12xf32>
    %cst_13 = arith.constant dense<0.000000e+00> : vector<12xf32>
    %41 = vector.multi_reduction <add>, %40, %cst_13 [0] : vector<8x12xf32> to vector<12xf32>
    %42 = vector.shape_cast %41 : vector<12xf32> to vector<1x12xf32>
    %43 = vector.extract_strided_slice %42 {offsets = [0, 0], sizes = [1, 6], strides = [1, 1]} : vector<1x12xf32> to vector<1x6xf32>
    %44 = vector.shape_cast %43 : vector<1x6xf32> to vector<1x1x6xf32>
    %cst_14 = arith.constant dense<0.000000e+00> : vector<1xf32>
    %45 = vector.multi_reduction <add>, %44, %cst_14 [1, 2] : vector<1x1x6xf32> to vector<1xf32>
    %46 = vector.shape_cast %45 : vector<1xf32> to vector<1x1x1xf32>
    %47 = vector.extract %46[0, 0, 0] : f32 from vector<1x1x1xf32>
    %48 = vector.extract_strided_slice %42 {offsets = [0, 6], sizes = [1, 6], strides = [1, 1]} : vector<1x12xf32> to vector<1x6xf32>
    %49 = vector.shape_cast %48 : vector<1x6xf32> to vector<1x1x6xf32>
    %cst_15 = arith.constant dense<0.000000e+00> : vector<1xf32>
    %50 = vector.multi_reduction <add>, %49, %cst_15 [1, 2] : vector<1x1x6xf32> to vector<1xf32>
    %51 = vector.shape_cast %50 : vector<1xf32> to vector<1x1x1xf32>
    %52 = vector.extract %51[0, 0, 0] : f32 from vector<1x1x1xf32>
    %cst_16 = arith.constant 0.020833334 : f32
    %53 = arith.mulf %47, %cst_16 : f32
    %cst_17 = arith.constant 0.020833334 : f32
    %54 = arith.mulf %52, %cst_17 : f32
    %55 = arith.mulf %53, %53 : f32
    %56 = arith.subf %54, %55 : f32
    %cst_18 = arith.constant 0.000000e+00 : f32
    %57 = arith.maximumf %56, %cst_18 : f32
    %cst_19 = arith.constant 9.99999974E-6 : f32
    %58 = arith.addf %57, %cst_19 : f32
    %59 = math.rsqrt %58 : f32
    %c8_i32_20 = arith.constant 8 : i32
    %60 = vector.broadcast %c8_i32_20 : i32 to vector<16x1xi32>
    %61 = arith.cmpi sge, %8, %60 : vector<16x1xi32>
    %c16_i32 = arith.constant 16 : i32
    %62 = vector.broadcast %c16_i32 : i32 to vector<16x1xi32>
    %63 = arith.cmpi slt, %8, %62 : vector<16x1xi32>
    %64 = arith.andi %61, %63 : vector<16x1xi1>
    %65 = vector.broadcast %53 : f32 to vector<16x1xf32>
    %66 = arith.select %64, %65, %37 : vector<16x1xi1>, vector<16x1xf32>
    %67 = vector.broadcast %59 : f32 to vector<16x1xf32>
    %68 = arith.select %64, %67, %39 : vector<16x1xi1>, vector<16x1xf32>
    %69 = vector.broadcast %66 : vector<16x1xf32> to vector<16x6xf32>
    %70 = arith.subf %5, %69 : vector<16x6xf32>
    %c144 = arith.constant 144 : index
    %c0_21 = arith.constant 0 : index
    %71 = vector.load %arg2[%c144, %c0_21] : memref<224x128xf32, #tpu.memory_space<vmem>>, vector<16x6xf32>
    %72 = vector.broadcast %68 : vector<16x1xf32> to vector<16x6xf32>
    %73 = arith.mulf %72, %71 : vector<16x6xf32>
    %74 = arith.mulf %70, %73 : vector<16x6xf32>
    %c160 = arith.constant 160 : index
    %c0_22 = arith.constant 0 : index
    %75 = vector.load %arg2[%c160, %c0_22] : memref<224x128xf32, #tpu.memory_space<vmem>>, vector<16x6xf32>
    %76 = arith.addf %74, %75 : vector<16x6xf32>
    %cst_23 = arith.constant 0.000000e+00 : f32
    %77 = vector.broadcast %cst_23 : f32 to vector<16x6xf32>
    %78 = arith.cmpf oge, %76, %77 : vector<16x6xf32>
    %cst_24 = arith.constant 1.000000e-01 : f32
    %79 = vector.broadcast %cst_24 : f32 to vector<16x6xf32>
    %80 = arith.mulf %79, %76 : vector<16x6xf32>
    %81 = arith.select %78, %76, %80 : vector<16x6xi1>, vector<16x6xf32>
    %c8 = arith.constant 8 : index
    %c0_25 = arith.constant 0 : index
    %82 = vector.load %arg2[%c8, %c0_25] : memref<224x128xf32, #tpu.memory_space<vmem>>, vector<6x12xf32>
    %cst_26 = arith.constant dense<0.000000e+00> : vector<16x12xf32>
    %83 = tpu.matmul %81, %82, %cst_26 {dimension_numbers = #tpu.dot_dimension_numbers<[1], [0], [0], [1], [0, 0, 1, 1], [], []>} : vector<16x6xf32>, vector<6x12xf32>, vector<16x12xf32> -> vector<16x12xf32>
    %c209 = arith.constant 209 : index
    %c0_27 = arith.constant 0 : index
    %84 = vector.load %arg2[%c209, %c0_27] : memref<224x128xf32, #tpu.memory_space<vmem>>, vector<1x12xf32>
    %85 = vector.broadcast %84 : vector<1x12xf32> to vector<16x12xf32>
    %86 = arith.addf %83, %85 : vector<16x12xf32>
    %87 = arith.mulf %86, %86 : vector<16x12xf32>
    %88 = tpu.concatenate %86, %87 in 1 : vector<16x12xf32>, vector<16x12xf32> -> vector<16x24xf32>
    %89 = tpu.iota {dimensions = array<i32: 0>} : vector<16x1xi32>
    %cst_28 = arith.constant 0.000000e+00 : f32
    %90 = vector.broadcast %cst_28 : f32 to vector<16x1xf32>
    %cst_29 = arith.constant 0.000000e+00 : f32
    %91 = vector.broadcast %cst_29 : f32 to vector<16x1xf32>
    %92 = vector.extract_strided_slice %88 {offsets = [0, 0], sizes = [8, 24], strides = [1, 1]} : vector<16x24xf32> to vector<8x24xf32>
    %cst_30 = arith.constant dense<0.000000e+00> : vector<24xf32>
    %93 = vector.multi_reduction <add>, %92, %cst_30 [0] : vector<8x24xf32> to vector<24xf32>
    %94 = vector.shape_cast %93 : vector<24xf32> to vector<1x24xf32>
    %95 = vector.extract_strided_slice %94 {offsets = [0, 0], sizes = [1, 12], strides = [1, 1]} : vector<1x24xf32> to vector<1x12xf32>
    %96 = vector.shape_cast %95 : vector<1x12xf32> to vector<1x1x12xf32>
    %cst_31 = arith.constant dense<0.000000e+00> : vector<1xf32>
    %97 = vector.multi_reduction <add>, %96, %cst_31 [1, 2] : vector<1x1x12xf32> to vector<1xf32>
    %98 = vector.shape_cast %97 : vector<1xf32> to vector<1x1x1xf32>
    %99 = vector.extract %98[0, 0, 0] : f32 from vector<1x1x1xf32>
    %100 = vector.extract_strided_slice %94 {offsets = [0, 12], sizes = [1, 12], strides = [1, 1]} : vector<1x24xf32> to vector<1x12xf32>
    %101 = vector.shape_cast %100 : vector<1x12xf32> to vector<1x1x12xf32>
    %cst_32 = arith.constant dense<0.000000e+00> : vector<1xf32>
    %102 = vector.multi_reduction <add>, %101, %cst_32 [1, 2] : vector<1x1x12xf32> to vector<1xf32>
    %103 = vector.shape_cast %102 : vector<1xf32> to vector<1x1x1xf32>
    %104 = vector.extract %103[0, 0, 0] : f32 from vector<1x1x1xf32>
    %cst_33 = arith.constant 0.010416667 : f32
    %105 = arith.mulf %99, %cst_33 : f32
    %cst_34 = arith.constant 0.010416667 : f32
    %106 = arith.mulf %104, %cst_34 : f32
    %107 = arith.mulf %105, %105 : f32
    %108 = arith.subf %106, %107 : f32
    %cst_35 = arith.constant 0.000000e+00 : f32
    %109 = arith.maximumf %108, %cst_35 : f32
    %cst_36 = arith.constant 9.99999974E-6 : f32
    %110 = arith.addf %109, %cst_36 : f32
    %111 = math.rsqrt %110 : f32
    %c0_i32_37 = arith.constant 0 : i32
    %112 = vector.broadcast %c0_i32_37 : i32 to vector<16x1xi32>
    %113 = arith.cmpi sge, %89, %112 : vector<16x1xi32>
    %c8_i32_38 = arith.constant 8 : i32
    %114 = vector.broadcast %c8_i32_38 : i32 to vector<16x1xi32>
    %115 = arith.cmpi slt, %89, %114 : vector<16x1xi32>
    %116 = arith.andi %113, %115 : vector<16x1xi1>
    %117 = vector.broadcast %105 : f32 to vector<16x1xf32>
    %118 = arith.select %116, %117, %90 : vector<16x1xi1>, vector<16x1xf32>
    %119 = vector.broadcast %111 : f32 to vector<16x1xf32>
    %120 = arith.select %116, %119, %91 : vector<16x1xi1>, vector<16x1xf32>
    %121 = vector.extract_strided_slice %88 {offsets = [8, 0], sizes = [8, 24], strides = [1, 1]} : vector<16x24xf32> to vector<8x24xf32>
    %cst_39 = arith.constant dense<0.000000e+00> : vector<24xf32>
    %122 = vector.multi_reduction <add>, %121, %cst_39 [0] : vector<8x24xf32> to vector<24xf32>
    %123 = vector.shape_cast %122 : vector<24xf32> to vector<1x24xf32>
    %124 = vector.extract_strided_slice %123 {offsets = [0, 0], sizes = [1, 12], strides = [1, 1]} : vector<1x24xf32> to vector<1x12xf32>
    %125 = vector.shape_cast %124 : vector<1x12xf32> to vector<1x1x12xf32>
    %cst_40 = arith.constant dense<0.000000e+00> : vector<1xf32>
    %126 = vector.multi_reduction <add>, %125, %cst_40 [1, 2] : vector<1x1x12xf32> to vector<1xf32>
    %127 = vector.shape_cast %126 : vector<1xf32> to vector<1x1x1xf32>
    %128 = vector.extract %127[0, 0, 0] : f32 from vector<1x1x1xf32>
    %129 = vector.extract_strided_slice %123 {offsets = [0, 12], sizes = [1, 12], strides = [1, 1]} : vector<1x24xf32> to vector<1x12xf32>
    %130 = vector.shape_cast %129 : vector<1x12xf32> to vector<1x1x12xf32>
    %cst_41 = arith.constant dense<0.000000e+00> : vector<1xf32>
    %131 = vector.multi_reduction <add>, %130, %cst_41 [1, 2] : vector<1x1x12xf32> to vector<1xf32>
    %132 = vector.shape_cast %131 : vector<1xf32> to vector<1x1x1xf32>
    %133 = vector.extract %132[0, 0, 0] : f32 from vector<1x1x1xf32>
    %cst_42 = arith.constant 0.010416667 : f32
    %134 = arith.mulf %128, %cst_42 : f32
    %cst_43 = arith.constant 0.010416667 : f32
    %135 = arith.mulf %133, %cst_43 : f32
    %136 = arith.mulf %134, %134 : f32
    %137 = arith.subf %135, %136 : f32
    %cst_44 = arith.constant 0.000000e+00 : f32
    %138 = arith.maximumf %137, %cst_44 : f32
    %cst_45 = arith.constant 9.99999974E-6 : f32
    %139 = arith.addf %138, %cst_45 : f32
    %140 = math.rsqrt %139 : f32
    %c8_i32_46 = arith.constant 8 : i32
    %141 = vector.broadcast %c8_i32_46 : i32 to vector<16x1xi32>
    %142 = arith.cmpi sge, %89, %141 : vector<16x1xi32>
    %c16_i32_47 = arith.constant 16 : i32
    %143 = vector.broadcast %c16_i32_47 : i32 to vector<16x1xi32>
    %144 = arith.cmpi slt, %89, %143 : vector<16x1xi32>
    %145 = arith.andi %142, %144 : vector<16x1xi1>
    %146 = vector.broadcast %134 : f32 to vector<16x1xf32>
    %147 = arith.select %145, %146, %118 : vector<16x1xi1>, vector<16x1xf32>
    %148 = vector.broadcast %140 : f32 to vector<16x1xf32>
    %149 = arith.select %145, %148, %120 : vector<16x1xi1>, vector<16x1xf32>
    %150 = vector.broadcast %147 : vector<16x1xf32> to vector<16x12xf32>
    %151 = arith.subf %86, %150 : vector<16x12xf32>
    %c176 = arith.constant 176 : index
    %c0_48 = arith.constant 0 : index
    %152 = vector.load %arg2[%c176, %c0_48] : memref<224x128xf32, #tpu.memory_space<vmem>>, vector<16x12xf32>
    %153 = vector.broadcast %149 : vector<16x1xf32> to vector<16x12xf32>
    %154 = arith.mulf %153, %152 : vector<16x12xf32>
    %155 = arith.mulf %151, %154 : vector<16x12xf32>
    %c192 = arith.constant 192 : index
    %c0_49 = arith.constant 0 : index
    %156 = vector.load %arg2[%c192, %c0_49] : memref<224x128xf32, #tpu.memory_space<vmem>>, vector<16x12xf32>
    %157 = arith.addf %155, %156 : vector<16x12xf32>
    %cst_50 = arith.constant 0.000000e+00 : f32
    %158 = vector.broadcast %cst_50 : f32 to vector<16x12xf32>
    %159 = arith.cmpf oge, %157, %158 : vector<16x12xf32>
    %cst_51 = arith.constant 1.000000e-01 : f32
    %160 = vector.broadcast %cst_51 : f32 to vector<16x12xf32>
    %161 = arith.mulf %160, %157 : vector<16x12xf32>
    %162 = arith.select %159, %157, %161 : vector<16x12xi1>, vector<16x12xf32>
    %c16 = arith.constant 16 : index
    %c0_52 = arith.constant 0 : index
    %163 = vector.load %arg2[%c16, %c0_52] : memref<224x128xf32, #tpu.memory_space<vmem>>, vector<12x24xf32>
    %cst_53 = arith.constant dense<0.000000e+00> : vector<16x24xf32>
    %164 = tpu.matmul %162, %163, %cst_53 {dimension_numbers = #tpu.dot_dimension_numbers<[1], [0], [0], [1], [0, 0, 1, 1], [], []>} : vector<16x12xf32>, vector<12x24xf32>, vector<16x24xf32> -> vector<16x24xf32>
    %c210 = arith.constant 210 : index
    %c0_54 = arith.constant 0 : index
    %165 = vector.load %arg2[%c210, %c0_54] : memref<224x128xf32, #tpu.memory_space<vmem>>, vector<1x24xf32>
    %166 = vector.broadcast %165 : vector<1x24xf32> to vector<16x24xf32>
    %167 = arith.addf %164, %166 : vector<16x24xf32>
    %c32 = arith.constant 32 : index
    %c0_55 = arith.constant 0 : index
    %168 = vector.load %arg2[%c32, %c0_55] : memref<224x128xf32, #tpu.memory_space<vmem>>, vector<24x12xf32>
    %cst_56 = arith.constant dense<0.000000e+00> : vector<16x12xf32>
    %169 = tpu.matmul %167, %168, %cst_56 {dimension_numbers = #tpu.dot_dimension_numbers<[1], [0], [0], [1], [0, 0, 1, 1], [], []>} : vector<16x24xf32>, vector<24x12xf32>, vector<16x12xf32> -> vector<16x12xf32>
    %c211 = arith.constant 211 : index
    %c0_57 = arith.constant 0 : index
    %170 = vector.load %arg2[%c211, %c0_57] : memref<224x128xf32, #tpu.memory_space<vmem>>, vector<1x12xf32>
    %171 = vector.broadcast %170 : vector<1x12xf32> to vector<16x12xf32>
    %172 = arith.addf %169, %171 : vector<16x12xf32>
    %c56 = arith.constant 56 : index
    %c0_58 = arith.constant 0 : index
    %173 = vector.load %arg2[%c56, %c0_58] : memref<224x128xf32, #tpu.memory_space<vmem>>, vector<24x12xf32>
    %cst_59 = arith.constant dense<0.000000e+00> : vector<16x12xf32>
    %174 = tpu.matmul %167, %173, %cst_59 {dimension_numbers = #tpu.dot_dimension_numbers<[1], [0], [0], [1], [0, 0, 1, 1], [], []>} : vector<16x24xf32>, vector<24x12xf32>, vector<16x12xf32> -> vector<16x12xf32>
    %c212 = arith.constant 212 : index
    %c0_60 = arith.constant 0 : index
    %175 = vector.load %arg2[%c212, %c0_60] : memref<224x128xf32, #tpu.memory_space<vmem>>, vector<1x12xf32>
    %176 = vector.broadcast %175 : vector<1x12xf32> to vector<16x12xf32>
    %177 = arith.addf %174, %176 : vector<16x12xf32>
    %c80 = arith.constant 80 : index
    %c0_61 = arith.constant 0 : index
    %178 = vector.load %arg2[%c80, %c0_61] : memref<224x128xf32, #tpu.memory_space<vmem>>, vector<24x12xf32>
    %cst_62 = arith.constant dense<0.000000e+00> : vector<16x12xf32>
    %179 = tpu.matmul %167, %178, %cst_62 {dimension_numbers = #tpu.dot_dimension_numbers<[1], [0], [0], [1], [0, 0, 1, 1], [], []>} : vector<16x24xf32>, vector<24x12xf32>, vector<16x12xf32> -> vector<16x12xf32>
    %c213 = arith.constant 213 : index
    %c0_63 = arith.constant 0 : index
    %180 = vector.load %arg2[%c213, %c0_63] : memref<224x128xf32, #tpu.memory_space<vmem>>, vector<1x12xf32>
    %181 = vector.broadcast %180 : vector<1x12xf32> to vector<16x12xf32>
    %182 = arith.addf %179, %181 : vector<16x12xf32>
    %cst_64 = arith.constant dense<0.000000e+00> : vector<16x16xf32>
    %183 = tpu.matmul %172, %177, %cst_64 {dimension_numbers = #tpu.dot_dimension_numbers<[1], [1], [0], [0], [0, 0, 1, 0], [], []>} : vector<16x12xf32>, vector<16x12xf32>, vector<16x16xf32> -> vector<16x16xf32>
    %184 = tpu.iota {dimensions = array<i32: 0>} : vector<16x16xi32>
    %185 = tpu.iota {dimensions = array<i32: 1>} : vector<16x16xi32>
    %false = arith.constant false
    %186 = vector.broadcast %false : i1 to vector<16x16xi1>
    %c0_i32_65 = arith.constant 0 : i32
    %187 = vector.broadcast %c0_i32_65 : i32 to vector<16x16xi32>
    %188 = arith.cmpi sge, %184, %187 : vector<16x16xi32>
    %c8_i32_66 = arith.constant 8 : i32
    %189 = vector.broadcast %c8_i32_66 : i32 to vector<16x16xi32>
    %190 = arith.cmpi slt, %184, %189 : vector<16x16xi32>
    %191 = arith.andi %188, %190 : vector<16x16xi1>
    %c0_i32_67 = arith.constant 0 : i32
    %192 = vector.broadcast %c0_i32_67 : i32 to vector<16x16xi32>
    %193 = arith.cmpi sge, %185, %192 : vector<16x16xi32>
    %c8_i32_68 = arith.constant 8 : i32
    %194 = vector.broadcast %c8_i32_68 : i32 to vector<16x16xi32>
    %195 = arith.cmpi slt, %185, %194 : vector<16x16xi32>
    %196 = arith.andi %193, %195 : vector<16x16xi1>
    %197 = arith.andi %191, %196 : vector<16x16xi1>
    %198 = arith.ori %186, %197 : vector<16x16xi1>
    %c8_i32_69 = arith.constant 8 : i32
    %199 = vector.broadcast %c8_i32_69 : i32 to vector<16x16xi32>
    %200 = arith.cmpi sge, %184, %199 : vector<16x16xi32>
    %c16_i32_70 = arith.constant 16 : i32
    %201 = vector.broadcast %c16_i32_70 : i32 to vector<16x16xi32>
    %202 = arith.cmpi slt, %184, %201 : vector<16x16xi32>
    %203 = arith.andi %200, %202 : vector<16x16xi1>
    %c8_i32_71 = arith.constant 8 : i32
    %204 = vector.broadcast %c8_i32_71 : i32 to vector<16x16xi32>
    %205 = arith.cmpi sge, %185, %204 : vector<16x16xi32>
    %c16_i32_72 = arith.constant 16 : i32
    %206 = vector.broadcast %c16_i32_72 : i32 to vector<16x16xi32>
    %207 = arith.cmpi slt, %185, %206 : vector<16x16xi32>
    %208 = arith.andi %205, %207 : vector<16x16xi1>
    %209 = arith.andi %203, %208 : vector<16x16xi1>
    %210 = arith.ori %198, %209 : vector<16x16xi1>
    %cst_73 = arith.constant 1.250000e-01 : f32
    %211 = vector.broadcast %cst_73 : f32 to vector<16x16xf32>
    %212 = arith.mulf %183, %211 : vector<16x16xf32>
    %cst_74 = arith.constant 0.000000e+00 : f32
    %213 = vector.broadcast %cst_74 : f32 to vector<16x16xf32>
    %214 = arith.select %210, %212, %213 : vector<16x16xi1>, vector<16x16xf32>
    %cst_75 = arith.constant dense<0.000000e+00> : vector<16x12xf32>
    %215 = tpu.matmul %214, %182, %cst_75 {dimension_numbers = #tpu.dot_dimension_numbers<[1], [0], [0], [1], [0, 0, 1, 1], [], []>} : vector<16x16xf32>, vector<16x12xf32>, vector<16x12xf32> -> vector<16x12xf32>
    %c104 = arith.constant 104 : index
    %c0_76 = arith.constant 0 : index
    %216 = vector.load %arg2[%c104, %c0_76] : memref<224x128xf32, #tpu.memory_space<vmem>>, vector<12x24xf32>
    %cst_77 = arith.constant dense<0.000000e+00> : vector<16x24xf32>
    %217 = tpu.matmul %215, %216, %cst_77 {dimension_numbers = #tpu.dot_dimension_numbers<[1], [0], [0], [1], [0, 0, 1, 1], [], []>} : vector<16x12xf32>, vector<12x24xf32>, vector<16x24xf32> -> vector<16x24xf32>
    %c214 = arith.constant 214 : index
    %c0_78 = arith.constant 0 : index
    %218 = vector.load %arg2[%c214, %c0_78] : memref<224x128xf32, #tpu.memory_space<vmem>>, vector<1x24xf32>
    %219 = vector.broadcast %218 : vector<1x24xf32> to vector<16x24xf32>
    %220 = arith.addf %217, %219 : vector<16x24xf32>
    %cst_79 = arith.constant dense<0.000000e+00> : vector<24xf32>
    %221 = vector.multi_reduction <add>, %220, %cst_79 [0] : vector<16x24xf32> to vector<24xf32>
    %222 = vector.shape_cast %221 : vector<24xf32> to vector<1x24xf32>
    %cst_80 = arith.constant 6.250000e-02 : f32
    %223 = vector.broadcast %cst_80 : f32 to vector<1x24xf32>
    %224 = arith.mulf %222, %223 : vector<1x24xf32>
    %225 = arith.mulf %220, %220 : vector<16x24xf32>
    %cst_81 = arith.constant dense<0.000000e+00> : vector<24xf32>
    %226 = vector.multi_reduction <add>, %225, %cst_81 [0] : vector<16x24xf32> to vector<24xf32>
    %227 = vector.shape_cast %226 : vector<24xf32> to vector<1x24xf32>
    %cst_82 = arith.constant 6.250000e-02 : f32
    %228 = vector.broadcast %cst_82 : f32 to vector<1x24xf32>
    %229 = arith.mulf %227, %228 : vector<1x24xf32>
    %230 = arith.mulf %224, %224 : vector<1x24xf32>
    %231 = arith.subf %229, %230 : vector<1x24xf32>
    %cst_83 = arith.constant 0.000000e+00 : f32
    %232 = vector.broadcast %cst_83 : f32 to vector<1x24xf32>
    %233 = arith.maximumf %231, %232 : vector<1x24xf32>
    %cst_84 = arith.constant 9.99999974E-6 : f32
    %234 = vector.broadcast %cst_84 : f32 to vector<1x24xf32>
    %235 = arith.addf %233, %234 : vector<1x24xf32>
    %236 = math.rsqrt %235 : vector<1x24xf32>
    %c215 = arith.constant 215 : index
    %c0_85 = arith.constant 0 : index
    %237 = vector.load %arg2[%c215, %c0_85] : memref<224x128xf32, #tpu.memory_space<vmem>>, vector<1x24xf32>
    %238 = arith.mulf %236, %237 : vector<1x24xf32>
    %c216 = arith.constant 216 : index
    %c0_86 = arith.constant 0 : index
    %239 = vector.load %arg2[%c216, %c0_86] : memref<224x128xf32, #tpu.memory_space<vmem>>, vector<1x24xf32>
    %240 = arith.mulf %224, %238 : vector<1x24xf32>
    %241 = arith.subf %239, %240 : vector<1x24xf32>
    %242 = vector.broadcast %238 : vector<1x24xf32> to vector<16x24xf32>
    %243 = arith.mulf %220, %242 : vector<16x24xf32>
    %244 = vector.broadcast %241 : vector<1x24xf32> to vector<16x24xf32>
    %245 = arith.addf %243, %244 : vector<16x24xf32>
    %246 = tpu.iota {dimensions = array<i32: 0>} : vector<8x1xi32>
    %cst_87 = arith.constant 0.000000e+00 : f32
    %247 = vector.broadcast %cst_87 : f32 to vector<8x24xf32>
    %248 = vector.extract_strided_slice %245 {offsets = [0, 0], sizes = [8, 24], strides = [1, 1]} : vector<16x24xf32> to vector<8x24xf32>
    %cst_88 = arith.constant dense<0xFF800000> : vector<24xf32>
    %249 = vector.multi_reduction <maximumf>, %248, %cst_88 [0] : vector<8x24xf32> to vector<24xf32>
    %250 = vector.shape_cast %249 : vector<24xf32> to vector<1x24xf32>
    %c0_i32_89 = arith.constant 0 : i32
    %251 = vector.broadcast %c0_i32_89 : i32 to vector<8x1xi32>
    %252 = arith.cmpi eq, %246, %251 : vector<8x1xi32>
    %253 = vector.shape_cast %252 : vector<8x1xi1> to vector<8x1xi1>
    %254 = vector.broadcast %253 : vector<8x1xi1> to vector<8x24xi1>
    %255 = vector.shape_cast %250 : vector<1x24xf32> to vector<1x24xf32>
    %256 = vector.broadcast %255 : vector<1x24xf32> to vector<8x24xf32>
    %257 = arith.select %254, %256, %247 : vector<8x24xi1>, vector<8x24xf32>
    %258 = vector.extract_strided_slice %245 {offsets = [8, 0], sizes = [8, 24], strides = [1, 1]} : vector<16x24xf32> to vector<8x24xf32>
    %cst_90 = arith.constant dense<0xFF800000> : vector<24xf32>
    %259 = vector.multi_reduction <maximumf>, %258, %cst_90 [0] : vector<8x24xf32> to vector<24xf32>
    %260 = vector.shape_cast %259 : vector<24xf32> to vector<1x24xf32>
    %c1_i32 = arith.constant 1 : i32
    %261 = vector.broadcast %c1_i32 : i32 to vector<8x1xi32>
    %262 = arith.cmpi eq, %246, %261 : vector<8x1xi32>
    %263 = vector.shape_cast %262 : vector<8x1xi1> to vector<8x1xi1>
    %264 = vector.broadcast %263 : vector<8x1xi1> to vector<8x24xi1>
    %265 = vector.shape_cast %260 : vector<1x24xf32> to vector<1x24xf32>
    %266 = vector.broadcast %265 : vector<1x24xf32> to vector<8x24xf32>
    %267 = arith.select %264, %266, %257 : vector<8x24xi1>, vector<8x24xf32>
    %c120 = arith.constant 120 : index
    %c0_91 = arith.constant 0 : index
    %268 = vector.load %arg2[%c120, %c0_91] : memref<224x128xf32, #tpu.memory_space<vmem>>, vector<24x12xf32>
    %cst_92 = arith.constant dense<0.000000e+00> : vector<8x12xf32>
    %269 = tpu.matmul %267, %268, %cst_92 {dimension_numbers = #tpu.dot_dimension_numbers<[1], [0], [0], [1], [0, 0, 1, 1], [], []>} : vector<8x24xf32>, vector<24x12xf32>, vector<8x12xf32> -> vector<8x12xf32>
    %c217 = arith.constant 217 : index
    %c0_93 = arith.constant 0 : index
    %270 = vector.load %arg2[%c217, %c0_93] : memref<224x128xf32, #tpu.memory_space<vmem>>, vector<1x12xf32>
    %271 = vector.broadcast %270 : vector<1x12xf32> to vector<8x12xf32>
    %272 = arith.addf %269, %271 : vector<8x12xf32>
    %cst_94 = arith.constant 0.000000e+00 : f32
    %273 = vector.broadcast %cst_94 : f32 to vector<8x12xf32>
    %274 = arith.cmpf oge, %272, %273 : vector<8x12xf32>
    %cst_95 = arith.constant 1.000000e-01 : f32
    %275 = vector.broadcast %cst_95 : f32 to vector<8x12xf32>
    %276 = arith.mulf %275, %272 : vector<8x12xf32>
    %277 = arith.select %274, %272, %276 : vector<8x12xi1>, vector<8x12xf32>
    %c218 = arith.constant 218 : index
    %c0_96 = arith.constant 0 : index
    %278 = vector.load %arg2[%c218, %c0_96] : memref<224x128xf32, #tpu.memory_space<vmem>>, vector<1x12xf32>
    %279 = vector.broadcast %278 : vector<1x12xf32> to vector<8x12xf32>
    %280 = arith.mulf %277, %279 : vector<8x12xf32>
    %cst_97 = arith.constant dense<0.000000e+00> : vector<8xf32>
    %281 = vector.multi_reduction <add>, %280, %cst_97 [1] : vector<8x12xf32> to vector<8xf32>
    %282 = vector.shape_cast %281 : vector<8xf32> to vector<8x1xf32>
    %c219 = arith.constant 219 : index
    %c0_98 = arith.constant 0 : index
    %283 = vector.load %arg2[%c219, %c0_98] : memref<224x128xf32, #tpu.memory_space<vmem>>, vector<1x1xf32>
    %284 = vector.broadcast %283 : vector<1x1xf32> to vector<8x1xf32>
    %285 = arith.addf %282, %284 : vector<8x1xf32>
    %286 = vector.shape_cast %285 : vector<8x1xf32> to vector<8x1xf32>
    %287 = vector.broadcast %286 : vector<8x1xf32> to vector<8x128xf32>
    %c0_99 = arith.constant 0 : index
    %c0_100 = arith.constant 0 : index
    %288 = vector.load %arg3[%c0_99, %c0_100] : memref<8x128xf32, #tpu.memory_space<vmem>>, vector<8x128xf32>
    tpu.vector_store %arg3[%c0_99, %c0_100], %287 {strides = array<i32>} : memref<8x128xf32, #tpu.memory_space<vmem>>, vector<8x128xf32>,
    return
  }
  func.func @transform_0(%arg0: i32) -> (i32, i32) {
    %c0_i32 = arith.constant 0 : i32
    %c0_i32_0 = arith.constant 0 : i32
    return %arg0, %c0_i32 : i32, i32
  }
  func.func @transform_1(%arg0: i32) -> (i32, i32) {
    %c0_i32 = arith.constant 0 : i32
    %c0_i32_0 = arith.constant 0 : i32
    %c0_i32_1 = arith.constant 0 : i32
    return %c0_i32, %c0_i32_0 : i32, i32
  }
  func.func @transform_2(%arg0: i32) -> (i32, i32) {
    %c0_i32 = arith.constant 0 : i32
    %c0_i32_0 = arith.constant 0 : i32
    return %arg0, %c0_i32 : i32, i32
  }
}

</mosaic_0001>

<bundles_post_ra>
// kernel: relation_discriminator.1
= control target key start
LH: loop header
LB: loop body
LE: loop exit
PB: predicated region body
PF: predicated region fallthrough
CT: control target
= control target key end

     0   :  { %7 = vsyncpa [#allocation3], 0  ;;  %s1535_s9 = smov [#allocation2]   ;;  %s1666_s0 = inlined_call_operand.vmem [shape: f32[16,3], index: 0, kind: input, shape index: {}]   ;;  %s1667_s1 = inlined_call_operand.hbm [shape: f32[224,128], index: 1, kind: input, shape index: {}]   ;;  %s1668_s2 = inlined_call_operand.vmem [shape: f32[8,128], index: 2, kind: output, shape index: {}]  }
   0x1   :  { %s15_s10 = sshll.u32 %s1535_s9, 4  ;;  %s1511_s13 = scalar_lea.hbm %s1667_s1, 3584  ;;  %s16_s10 = int_to_ptr.vmem [resolvable:$true] %s15_s10 }
   0x2   :  { %p1512_p0 = scmp.ne.s32.totalorder %s1667_s1, %s1511_s13  ;;  %p1515_p1 = scmp.lt.u32.totalorder %s1511_s13, %s1667_s1 }
   0x4   :  { %p1517_p2 = pnand %p1515_p1, %p1512_p0 }
   0x6   :  { %1520 = shalt.err (!%p1517_p2)
}
   0x7   :  { %s1521_s18 = scalar_lea.vmem %s16_s10, 3584  ;;  %p1526_p4 = scmp.lt.s32.totalorder %s16_s10, %s16_s10 }
   0x8   :  { %p1522_p3 = scmp.ne.s32.totalorder %s16_s10, %s1521_s18  ;;  %p1527_p5 = scmp.lt.s32.totalorder %s1521_s18, %s1521_s18 }
   0xa   :  { %p1528_p6 = por %p1527_p5, %p1526_p4 }
   0xc   :  { %p1529_p7 = pnand %p1528_p6, %p1522_p3 }
   0xe   :  { %1532 = shalt.err (!%p1529_p7)
}
   0xf   :  { %s1536_s19 = smov 128   ;;  %s1537_s20 = smov 8  }
  0x10   :  { %21 = dma.hbm_to_vmem [thread:$0]  %s1667_s1, 3584, %s16_s10, [#allocation3], %s1536_s19, %s1536_s19, %s1537_s20  }
  0x11   :  { %1533 = dma.done.wait [#allocation3], 3584  }
  0x12   :  { %1534 = vsyncadd [#allocation3], 4294963712  ;;  %vm40_vm0 = vcmask 1042432   ;;  %vm33_vm1 = vcmask 23552   ;;  %v27_v0 = vld [vmem:[#allocation2] sm:$0x7] }
  0x13   :  { %v25_v1 = vld [vmem:[%s1666_s0] sm:$0xff]  ;;  %v26_v2 = vld [vmem:[%s1666_s0 + $0x8] sm:$0xff]  ;;  %1351 = vmatprep.subr.msk.mxu0 %vm40_vm0, %v27_v0  ;;  %v1275_v3 = vld [vmem:[#allocation2 + $0xd0] ss:$0 sm:$0xff]  ;;  %s1538_s1 = smov 6   ;;  %vm129_vm2 = vcmask 48128  }
  0x14   :  { %1353 = vmatprep.mubr.msk.f32.mxu0 %vm33_vm1, %v25_v1  ;;  %1352 = vmatpush3.msk.msra.mxu0 %vm40_vm0, %v27_v0  ;;  %vm135_vm3 = vcmask 97280   ;;  %s1539_s0 = smov 122   ;;  %vm143_vm4 = vcmask 40960   ;;  %s1540_s5 = smov 0.0   ;;  %v243_v58 = vld [vmem:[#allocation2 + $0x90] sm:$0xff]  ;;  %v249_v62 = vld [vmem:[#allocation2 + $0xa0] sm:$0xff] }
  0x15   :  { %1354 = vmatmul.mubr.msk.f32.vlgmr.msra.gmra.mrb[0].mxu0 %vm33_vm1, %v26_v2  ;;  %vm271_vm6 = vcmask 1045504   ;;  %s1541_s18 = smov 12   ;;  %vm362_vm8 = vcmask 195584   ;;  %vm370_vm9 = vcmask 90112   ;;  %s1542_s19 = smov 116   ;;  %vm487_vm11 = vcmask 1043456   ;;  %vm1444_vm15 = vmpackc.low %vm135_vm3, %vm135_vm3 }
  0x16   :  { %vm1543_vm12 = vmmov 1  }
  0x17   :  { %vm1626_vm13 = vmpackc.low %vm487_vm11, %vm1543_vm12 }
  0xe8   :  { %v1355_v4 = vpop.f32.mrb[0].mxu0 }
  0xe9   :  { %v110_v5 = vpop.f32.mrb[1].mxu0  ;;  %v1583_v7 = vadd.f32 %v1355_v4, %v1275_v3 }
  0xea   :  { %v1581_v6 = vadd.f32 %v1275_v3, %v110_v5 }
  0xeb   :  { %v120_v9 = vmul.f32 %v1583_v7, %v1583_v7 }
  0xec   :  { %v119_v8 = vmul.f32 %v1581_v6, %v1581_v6 }
  0xee   :  { %123 = vrot.lane.b32.xlu0 %v119_v8, %s1538_s1 }
  0xf2   :  { %125 = vrot.lane.b32.xlu0 %v120_v9, %s1538_s1 }
 0x160   :  { %v124_v10 = vpop.permute.xlu0 %123 }
 0x161   :  { %v130_v11 = vsel %vm129_vm2, %v1581_v6, %v124_v10 }
 0x162   :  { %v136_v12 = vsel %vm135_vm3, %v130_v11, 0.0  ;;  %v259_v11 = vld [vmem:[#allocation2 + $0x8] sm:$0x3f] }
 0x163   :  { %v137_v13 = vrot.slane %v136_v12, 4  ;;  %1356 = vmatprep.subr.msk.mxu1 %vm271_vm6, %v259_v11 }
 0x164   :  { %v126_v19 = vpop.permute.xlu0 %125  ;;  %1357 = vmatpush3.msk.msra.mxu1 %vm271_vm6, %v259_v11  ;;  %vm1545_vm6 = vmmov 0  }
 0x165   :  { %v138_v14 = vadd.f32 %v137_v13, %v136_v12  ;;  %v131_v20 = vsel %vm129_vm2, %v1583_v7, %v126_v19  ;;  %v250_v19 = vld [vmem:[#allocation2 + $0xa8] sm:$0xff] }
 0x166   :  { %v189_v21 = vsel %vm135_vm3, %v131_v20, 0.0 }
 0x167   :  { %v139_v15 = vrot.slane %v138_v14, 2  ;;  %v190_v22 = vrot.slane %v189_v21, 4 }
 0x169   :  { %v140_v16 = vadd.f32 %v139_v15, %v138_v14  ;;  %v191_v23 = vadd.f32 %v190_v22, %v189_v21  ;;  %v244_v15 = vld [vmem:[#allocation2 + $0x98] sm:$0xff] }
 0x16b   :  { %v141_v17 = vrot.slane %v140_v16, 1  ;;  %v192_v24 = vrot.slane %v191_v23, 2 }
 0x16d   :  { %v142_v18 = vadd.f32 %v141_v17, %v140_v16  ;;  %v193_v25 = vadd.f32 %v192_v24, %v191_v23  ;;  %v1279_v24 = vld [vmem:[#allocation2 + $0xd1] ss:$0 sm:$0xff] }
 0x16f   :  { %155 = vrot.lane.b32.xlu1 %v142_v18, %s1539_s0  ;;  %v194_v26 = vrot.slane %v193_v25, 1  ;;  %v144_v27 = vsel %vm143_vm4, %v142_v18, 0.0 }
 0x171   :  { %v195_v28 = vadd.f32 %v194_v26, %v193_v25 }
 0x173   :  { %v196_v29 = vsel %vm143_vm4, %v195_v28, 0.0 }
 0x193   :  { %145 = vadd.xlane.f32.xlu1 %v144_v27 }
 0x197   :  { %197 = vadd.xlane.f32.xlu1 %v196_v29 }
 0x1e1   :  { %v156_v30 = vpop.permute.xlu1 %155 }
 0x1e2   :  { %v158_v31 = vsel %vm143_vm4, %v156_v30, 0.0 }
 0x1e3   :  { %159 = vadd.xlane.f32.xlu0 %v158_v31 }
 0x1f9   :  { %207 = vrot.lane.b32.xlu0 %v195_v28, %s1539_s0 }
 0x220   :  { %v146_v32 = vpop.xlane.xlu1 %145 }
 0x221   :  { %v147_v33 = vrot.slane %v146_v32, 4 }
 0x223   :  { %v148_v34 = vadd.f32 %v147_v33, %v146_v32 }
 0x224   :  { %v198_v48 = vpop.xlane.xlu1 %197 }
 0x225   :  { %v149_v35 = vrot.slane %v148_v34, 2  ;;  %v199_v49 = vrot.slane %v198_v48, 4 }
 0x227   :  { %v150_v36 = vadd.f32 %v149_v35, %v148_v34  ;;  %v200_v50 = vadd.f32 %v199_v49, %v198_v48 }
 0x229   :  { %v151_v37 = vrot.slane %v150_v36, 1  ;;  %v201_v51 = vrot.slane %v200_v50, 2 }
 0x22b   :  { %v152_v38 = vadd.f32 %v151_v37, %v150_v36  ;;  %v202_v53 = vadd.f32 %v201_v51, %v200_v50 }
 0x22d   :  { %1462 = vpush %v152_v38  ;;  %v203_v54 = vrot.slane %v202_v53, 1 }
 0x22f   :  { %v204_v56 = vadd.f32 %v203_v54, %v202_v53 }
 0x25e   :  { %s1463_s27 = spop %1462 }
 0x25f   :  { %s168_s28 = smul.f32 0.020833334, %s1463_s27 }
 0x261   :  { %s170_s29 = smul.f32 %s168_s28, %s168_s28  ;;  %v183_v57 = vstv %s168_s28 }
 0x262   :  { %v241_v60 = vsub.f32 %v1581_v6, %v183_v57 }
 0x270   :  { %v160_v39 = vpop.xlane.xlu0 %159 }
 0x271   :  { %v161_v40 = vrot.slane %v160_v39, 4 }
 0x273   :  { %v162_v41 = vadd.f32 %v161_v40, %v160_v39 }
 0x274   :  { %v208_v42 = vpop.permute.xlu0 %207 }
 0x275   :  { %v163_v43 = vrot.slane %v162_v41, 2  ;;  %v210_v44 = vsel %vm143_vm4, %v208_v42, 0.0 }
 0x276   :  { %211 = vadd.xlane.f32.xlu1 %v210_v44 }
 0x277   :  { %v164_v45 = vadd.f32 %v163_v43, %v162_v41 }
 0x279   :  { %v165_v46 = vrot.slane %v164_v45, 1 }
 0x27b   :  { %v166_v47 = vadd.f32 %v165_v46, %v164_v45 }
 0x27d   :  { %1464 = vpush %v166_v47 }
 0x2ae   :  { %s1465_s30 = spop %1464 }
 0x2af   :  { %s169_s3 = smul.f32 0.020833334, %s1465_s30 }
 0x2b1   :  { %s171_s4 = ssub.f32 %s169_s3, %s170_s29 }
 0x2b3   :  { %s172_s6 = smax.f32 %s1540_s5, %s171_s4 }
 0x2b4   :  { %s173_s7 = sadd.f32 1e-05, %s172_s6 }
 0x2b6   :  { %v174_v52 = vstv %s173_s7 }
 0x2b7   :  { %1501 = vrsqrt.f32 %v174_v52 }
 0x2c1   :  { %v1502_v55 = vpop.eup %1501 }
 0x2c2   :  { %1466 = vpush %v1502_v55 }
 0x2c3   :  { %1468 = vpush %v204_v56 }
 0x2f3   :  { %s1467_s8 = spop %1466 }
 0x2f4   :  { %v186_v59 = vstv %s1467_s8  ;;  %s1469_s9 = spop %1468 }
 0x2f5   :  { %v245_v61 = vmul.f32 %v243_v58, %v186_v59  ;;  %s220_s10 = smul.f32 0.020833334, %s1469_s9 }
 0x2f7   :  { %v247_v63 = vmul.f32 %v245_v61, %v241_v60  ;;  %s222_s11 = smul.f32 %s220_s10, %s220_s10  ;;  %v235_v14 = vstv %s220_s10 }
 0x2f8   :  { %v242_v17 = vsub.f32 %v1583_v7, %v235_v14 }
 0x2f9   :  { %v251_v0 = vadd.f32 %v249_v62, %v247_v63 }
 0x2fb   :  { %vm253_vm5 = vcmp.ge.f32.partialorder %v251_v0, 0.0  ;;  %v255_v1 = vmul.f32 0.1, %v251_v0 }
 0x2fd   :  { %v257_v2 = vsel %vm253_vm5, %v251_v0, %v255_v1  ;;  %vm926_vm5 = vcmask 130048  }
 0x2fe   :  { %1358 = vmatprep.mubr.msk.f32.mxu1 %vm129_vm2, %v257_v2 }
 0x303   :  { %v212_v3 = vpop.xlane.xlu1 %211 }
 0x304   :  { %v213_v4 = vrot.slane %v212_v3, 4 }
 0x306   :  { %v214_v5 = vadd.f32 %v213_v4, %v212_v3 }
 0x308   :  { %v215_v8 = vrot.slane %v214_v5, 2 }
 0x30a   :  { %v216_v9 = vadd.f32 %v215_v8, %v214_v5 }
 0x30c   :  { %v217_v10 = vrot.slane %v216_v9, 1 }
 0x30e   :  { %v218_v12 = vadd.f32 %v217_v10, %v216_v9 }
 0x310   :  { %1470 = vpush %v218_v12 }
 0x341   :  { %s1471_s12 = spop %1470 }
 0x342   :  { %s221_s13 = smul.f32 0.020833334, %s1471_s12 }
 0x344   :  { %s223_s14 = ssub.f32 %s221_s13, %s222_s11 }
 0x346   :  { %s224_s15 = smax.f32 %s1540_s5, %s223_s14 }
 0x347   :  { %s225_s16 = sadd.f32 1e-05, %s224_s15 }
 0x349   :  { %v226_v6 = vstv %s225_s16 }
 0x34a   :  { %1503 = vrsqrt.f32 %v226_v6 }
 0x354   :  { %v1504_v13 = vpop.eup %1503 }
 0x355   :  { %1472 = vpush %v1504_v13 }
 0x386   :  { %s1473_s17 = spop %1472 }
 0x387   :  { %v238_v16 = vstv %s1473_s17 }
 0x388   :  { %v246_v18 = vmul.f32 %v244_v15, %v238_v16  ;;  %v458_v15 = vld [vmem:[#allocation2 + $0xb0] sm:$0xff] }
 0x38a   :  { %v248_v20 = vmul.f32 %v246_v18, %v242_v17 }
 0x38c   :  { %v252_v21 = vadd.f32 %v250_v19, %v248_v20  ;;  %v464_v19 = vld [vmem:[#allocation2 + $0xc0] sm:$0xff] }
 0x38e   :  { %vm254_vm7 = vcmp.ge.f32.partialorder %v252_v21, 0.0  ;;  %v256_v22 = vmul.f32 0.1, %v252_v21 }
 0x390   :  { %v258_v23 = vsel %vm254_vm7, %v252_v21, %v256_v22 }
 0x391   :  { %1359 = vmatmul.mubr.msk.f32.vlgmr.msra.gmra.mrb[0].mxu1 %vm129_vm2, %v258_v23 }
 0x464   :  { %v1360_v25 = vpop.f32.mrb[0].mxu1 }
 0x465   :  { %v1605_v26 = vadd.f32 %v1360_v25, %v1279_v24  ;;  %v341_v27 = vpop.f32.mrb[1].mxu1 }
 0x466   :  { %v1607_v28 = vadd.f32 %v1279_v24, %v341_v27 }
 0x467   :  { %v351_v29 = vmul.f32 %v1605_v26, %v1605_v26 }
 0x468   :  { %v350_v7 = vmul.f32 %v1607_v28, %v1607_v28 }
 0x469   :  { %356 = vrot.lane.b32.xlu0 %v351_v29, %s1541_s18 }
 0x46a   :  { %354 = vrot.lane.b32.xlu1 %v350_v7, %s1541_s18 }
 0x4db   :  { %v357_v30 = vpop.permute.xlu0 %356 }
 0x4dc   :  { %v361_v31 = vsel %vm135_vm3, %v1605_v26, %v357_v30  ;;  %v355_v32 = vpop.permute.xlu1 %354  ;;  %v474_v30 = vld [vmem:[#allocation2 + $0x10] sm:$0xff] }
 0x4dd   :  { %v410_v33 = vsel %vm362_vm8, %v361_v31, 0.0  ;;  %v360_v34 = vsel %vm135_vm3, %v1607_v28, %v355_v32  ;;  %v475_v31 = vld [vmem:[#allocation2 + $0x18] sm:$0xf] }
 0x4de   :  { %v411_v35 = vrot.slane %v410_v33, 4  ;;  %v363_v36 = vsel %vm362_vm8, %v360_v34, 0.0 }
 0x4df   :  { %v364_v37 = vrot.slane %v363_v36, 4 }
 0x4e0   :  { %v412_v38 = vadd.f32 %v411_v35, %v410_v33  ;;  %v1425_v33 = vpack.c.bf16 %v475_v31, %v474_v30  ;;  %v566_v35 = vld [vmem:[#allocation2 + $0x20] sm:$0xff]  ;;  %v1165_v31 = vld [vmem:[#allocation2 + $0x78] sm:$0xff] }
 0x4e1   :  { %v365_v39 = vadd.f32 %v364_v37, %v363_v36  ;;  %v567_v36 = vld [vmem:[#allocation2 + $0x28] sm:$0xff]  ;;  %v655_v37 = vld [vmem:[#allocation2 + $0x38] sm:$0xff] }
 0x4e2   :  { %v413_v40 = vrot.slane %v412_v38, 2  ;;  %1427 = vmatprep.subr.msk.bf16.mxu0 %vm1626_vm13, %v1425_v33 }
 0x4e3   :  { %v366_v41 = vrot.slane %v365_v39, 2  ;;  %1430 = vmatpush3.bf16.msk.msra.mxu0 %vm1626_vm13, %v1425_v33  ;;  %v1544_v33 = vmov 0.0|0.0  }
 0x4e4   :  { %v414_v42 = vadd.f32 %v413_v40, %v412_v38  ;;  %v1431_v38 = vpack.c.bf16 %v567_v36, %v566_v35  ;;  %v1546_v35 = vmov 0.0   ;;  %v1167_v36 = vld [vmem:[#allocation2 + $0x88] sm:$0xff] }
 0x4e5   :  { %v367_v43 = vadd.f32 %v366_v41, %v365_v39  ;;  %v656_v39 = vld [vmem:[#allocation2 + $0x40] sm:$0xff] }
 0x4e6   :  { %v415_v45 = vrot.slane %v414_v42, 1  ;;  %v1435_v40 = vpack.c.bf16 %v656_v39, %v655_v37  ;;  %1432 = vmatprep.subr.bf16.mxu1 %v1431_v38 }
 0x4e7   :  { %v368_v44 = vrot.slane %v367_v43, 1  ;;  %1434 = vmatpush3.bf16.msra.mxu1 %v1431_v38 }
 0x4e8   :  { %v416_v48 = vadd.f32 %v415_v45, %v414_v42  ;;  %1436 = vmatprep.subr.bf16.mxu0 %v1435_v40 }
 0x4e9   :  { %v369_v46 = vadd.f32 %v368_v44, %v367_v43  ;;  %v459_v44 = vld [vmem:[#allocation2 + $0xb8] sm:$0xff] }
 0x4ea   :  { %v417_v49 = vsel %vm370_vm9, %v416_v48, 0.0 }
 0x4eb   :  { %382 = vrot.lane.b32.xlu0 %v369_v46, %s1542_s19  ;;  %v371_v47 = vsel %vm370_vm9, %v369_v46, 0.0 }
 0x4ec   :  { %372 = vadd.xlane.f32.xlu1 %v371_v47 }
 0x4f0   :  { %418 = vadd.xlane.f32.xlu1 %v417_v49 }
 0x55d   :  { %v383_v50 = vpop.permute.xlu0 %382 }
 0x55e   :  { %v385_v51 = vsel %vm370_vm9, %v383_v50, 0.0 }
 0x55f   :  { %386 = vadd.xlane.f32.xlu0 %v385_v51 }
 0x575   :  { %428 = vrot.lane.b32.xlu0 %v416_v48, %s1542_s19  ;;  %v465_v48 = vld [vmem:[#allocation2 + $0xc8] sm:$0xff] }
 0x579   :  { %v373_v52 = vpop.xlane.xlu1 %372 }
 0x57a   :  { %v374_v53 = vrot.slane %v373_v52, 4 }
 0x57c   :  { %v375_v54 = vadd.f32 %v374_v53, %v373_v52  ;;  %v568_v53 = vld [vmem:[#allocation2 + $0x30] sm:$0xff] }
 0x57d   :  { %v419_v4 = vpop.xlane.xlu1 %418  ;;  %1372 = vmatprep.subr.mxu1 %v568_v53 }
 0x57e   :  { %v376_v55 = vrot.slane %v375_v54, 2  ;;  %v420_v5 = vrot.slane %v419_v4, 4  ;;  %1373 = vmatpush3.msra.mxu1 %v568_v53 }
 0x580   :  { %v377_v56 = vadd.f32 %v376_v55, %v375_v54  ;;  %v421_v8 = vadd.f32 %v420_v5, %v419_v4  ;;  %v657_v54 = vld [vmem:[#allocation2 + $0x48] sm:$0xff]  ;;  %v738_v55 = vld [vmem:[#allocation2 + $0x50] sm:$0xff] }
 0x582   :  { %v378_v57 = vrot.slane %v377_v56, 1  ;;  %v422_v9 = vrot.slane %v421_v8, 2 }
 0x584   :  { %v379_v58 = vadd.f32 %v378_v57, %v377_v56  ;;  %v423_v11 = vadd.f32 %v422_v9, %v421_v8  ;;  %v739_v56 = vld [vmem:[#allocation2 + $0x58] sm:$0xff] }
 0x585   :  { %v1439_v57 = vpack.c.bf16 %v739_v56, %v738_v55 }
 0x586   :  { %1474 = vpush %v379_v58  ;;  %v424_v12 = vrot.slane %v423_v11, 1 }
 0x587   :  { %1440 = vmatprep.subr.bf16.mxu1 %v1439_v57 }
 0x588   :  { %v425_v13 = vadd.f32 %v424_v12, %v423_v11  ;;  %v1293_v11 = vld [vmem:[#allocation2 + $0xd5] ss:$0 sm:$0xff] }
 0x5b7   :  { %s1475_s20 = spop %1474 }
 0x5b8   :  { %s395_s21 = smul.f32 0.010416667, %s1475_s20 }
 0x5ba   :  { %s397_s22 = smul.f32 %s395_s21, %s395_s21  ;;  %v404_v14 = vstv %s395_s21 }
 0x5bb   :  { %v456_v17 = vsub.f32 %v1607_v28, %v404_v14  ;;  %v1302_v28 = vld [vmem:[#allocation2 + $0xd6] ss:$0 sm:$0xff] }
 0x5ec   :  { %v387_v59 = vpop.xlane.xlu0 %386 }
 0x5ed   :  { %v388_v60 = vrot.slane %v387_v59, 4 }
 0x5ef   :  { %v389_v61 = vadd.f32 %v388_v60, %v387_v59 }
 0x5f0   :  { %v429_v62 = vpop.permute.xlu0 %428 }
 0x5f1   :  { %v390_v63 = vrot.slane %v389_v61, 2  ;;  %v431_v0 = vsel %vm370_vm9, %v429_v62, 0.0  ;;  %v740_v62 = vld [vmem:[#allocation2 + $0x60] sm:$0xff] }
 0x5f2   :  { %432 = vadd.xlane.f32.xlu1 %v431_v0  ;;  %v1287_v0 = vld [vmem:[#allocation2 + $0xd3] ss:$0 sm:$0xff] }
 0x5f3   :  { %v391_v1 = vadd.f32 %v390_v63, %v389_v61  ;;  %v1290_v63 = vld [vmem:[#allocation2 + $0xd4] ss:$0 sm:$0xff] }
 0x5f5   :  { %v392_v2 = vrot.slane %v391_v1, 1 }
 0x5f7   :  { %v393_v3 = vadd.f32 %v392_v2, %v391_v1 }
 0x5f9   :  { %1476 = vpush %v393_v3 }
 0x62a   :  { %s1477_s23 = spop %1476 }
 0x62b   :  { %s396_s24 = smul.f32 0.010416667, %s1477_s23 }
 0x62d   :  { %s398_s25 = ssub.f32 %s396_s24, %s397_s22 }
 0x62f   :  { %s399_s26 = smax.f32 %s1540_s5, %s398_s25 }
 0x630   :  { %s400_s1 = sadd.f32 1e-05, %s399_s26 }
 0x632   :  { %v401_v10 = vstv %s400_s1 }
 0x633   :  { %1505 = vrsqrt.f32 %v401_v10 }
 0x63d   :  { %v1506_v6 = vpop.eup %1505 }
 0x63e   :  { %1478 = vpush %v1506_v6 }
 0x63f   :  { %1480 = vpush %v425_v13 }
 0x66f   :  { %s1479_s0 = spop %1478 }
 0x670   :  { %v407_v16 = vstv %s1479_s0  ;;  %s1481_s27 = spop %1480 }
 0x671   :  { %v460_v18 = vmul.f32 %v458_v15, %v407_v16  ;;  %s441_s28 = smul.f32 0.010416667, %s1481_s27 }
 0x673   :  { %v462_v20 = vmul.f32 %v460_v18, %v456_v17  ;;  %s443_s29 = smul.f32 %s441_s28, %s441_s28  ;;  %v450_v43 = vstv %s441_s28  ;;  %v1008_v17 = vld [vmem:[#allocation2 + $0x68] sm:$0xff]  ;;  %v1009_v18 = vld [vmem:[#allocation2 + $0x70] sm:$0xf] }
 0x674   :  { %v457_v46 = vsub.f32 %v1605_v26, %v450_v43  ;;  %v1283_v26 = vld [vmem:[#allocation2 + $0xd2] ss:$0 sm:$0xff] }
 0x675   :  { %v466_v21 = vadd.f32 %v464_v19, %v462_v20  ;;  %v1453_v19 = vpack.c.bf16 %v1009_v18, %v1008_v17  ;;  %v132_v20 = vlaneseq }
 0x677   :  { %vm468_vm10 = vcmp.ge.f32.partialorder %v466_v21, 0.0  ;;  %v470_v22 = vmul.f32 0.1, %v466_v21 }
 0x679   :  { %v472_v23 = vsel %vm468_vm10, %v466_v21, %v470_v22  ;;  %v909_v21 = vand.u32 127, %v132_v20 }
 0x67a   :  { %1365 = vmatprep.mubr.msk.f32.mxu0 %vm135_vm3, %v472_v23 }
 0x67b   :  { %vm915_vm0 = vcmp.ge.s32.totalorder %v909_v21, 8  ;;  %vm916_vm1 = vcmp.lt.s32.totalorder %v909_v21, 16  ;;  %vm911_vm2 = vcmp.lt.s32.totalorder %v909_v21, 8 }
 0x67c   :  { %vm917_vm4 = vmand %vm915_vm0, %vm916_vm1 }
 0x67f   :  { %v433_v24 = vpop.xlane.xlu1 %432 }
 0x680   :  { %v434_v25 = vrot.slane %v433_v24, 4 }
 0x682   :  { %v435_v27 = vadd.f32 %v434_v25, %v433_v24 }
 0x684   :  { %v436_v29 = vrot.slane %v435_v27, 2 }
 0x686   :  { %v437_v7 = vadd.f32 %v436_v29, %v435_v27 }
 0x688   :  { %v438_v32 = vrot.slane %v437_v7, 1 }
 0x68a   :  { %v439_v34 = vadd.f32 %v438_v32, %v437_v7  ;;  %v1166_v32 = vld [vmem:[#allocation2 + $0x80] sm:$0xff] }
 0x68c   :  { %1482 = vpush %v439_v34  ;;  %v1460_v34 = vpack.c.bf16 %v1166_v32, %v1165_v31 }
 0x6bd   :  { %s1483_s30 = spop %1482 }
 0x6be   :  { %s442_s3 = smul.f32 0.010416667, %s1483_s30 }
 0x6c0   :  { %s444_s4 = ssub.f32 %s442_s3, %s443_s29 }
 0x6c2   :  { %s445_s6 = smax.f32 %s1540_s5, %s444_s4 }
 0x6c3   :  { %s446_s7 = sadd.f32 1e-05, %s445_s6 }
 0x6c5   :  { %v447_v41 = vstv %s446_s7 }
 0x6c6   :  { %1507 = vrsqrt.f32 %v447_v41 }
 0x6d0   :  { %v1508_v42 = vpop.eup %1507 }
 0x6d1   :  { %1484 = vpush %v1508_v42 }
 0x702   :  { %s1485_s8 = spop %1484 }
 0x703   :  { %v453_v45 = vstv %s1485_s8 }
 0x704   :  { %v461_v47 = vmul.f32 %v459_v44, %v453_v45 }
 0x706   :  { %v463_v49 = vmul.f32 %v461_v47, %v457_v46 }
 0x708   :  { %v467_v50 = vadd.f32 %v465_v48, %v463_v49 }
 0x70a   :  { %v471_v51 = vmul.f32 0.1, %v467_v50  ;;  %vm469_vm14 = vcmp.ge.f32.partialorder %v467_v50, 0.0 }
 0x70c   :  { %v473_v52 = vsel %vm469_vm14, %v467_v50, %v471_v51 }
 0x70d   :  { %1366 = vmatmul.mubr.msk.f32.vlgmr.msra.gmra.mrb[2].mxu0 %vm135_vm3, %v473_v52 }
 0x70e   :  { %1438 = vmatpush3.bf16.msra.mxu0 %v1435_v40 }
 0x70f   :  { %1381 = vmatprep.subr.mxu0 %v657_v54 }
 0x712   :  { %1382 = vmatpush3.msra.mxu0 %v657_v54 }
 0x7e0   :  { %v1367_v58 = vpop.f32.mrb[2].mxu0 }
 0x7e1   :  { %v557_v59 = vpop.f32.mrb[3].mxu0  ;;  %v563_v61 = vadd.f32 %v1367_v58, %v1283_v26 }
 0x7e2   :  { %v558_v60 = vadd.f32 %v1283_v26, %v557_v59 }
 0x7e4   :  { %1374 = vmatprep.mubr.msk.f32.mxu1 %vm362_vm8, %v558_v60  ;;  %1383 = vmatprep.mubr.msk.f32.mxu0 %vm362_vm8, %v558_v60 }
 0x7e5   :  { %1375 = vmatmul.mubr.msk.f32.vlgmr.msra.gmra.mrb[2].mxu1 %vm362_vm8, %v563_v61  ;;  %1384 = vmatmul.mubr.msk.f32.vlgmr.msra.gmra.mrb[4].mxu0 %vm362_vm8, %v563_v61 }
 0x7e6   :  { %1442 = vmatpush3.bf16.msra.mxu1 %v1439_v57  ;;  %1392 = vmatprep.mubr.msk.f32.mxu1 %vm362_vm8, %v558_v60 }
 0x7e7   :  { %1390 = vmatprep.subr.mxu1 %v740_v62 }
 0x7ea   :  { %1391 = vmatpush3.msra.mxu1 %v740_v62 }
 0x7eb   :  { %1393 = vmatmul.mubr.msk.f32.vlgmr.msra.gmra.mrb[4].mxu1 %vm362_vm8, %v563_v61 }
 0x8b8   :  { %v1376_v1 = vpop.f32.mrb[2].mxu1  ;;  %v1385_v2 = vpop.f32.mrb[4].mxu0 }
 0x8b9   :  { %v735_v3 = vadd.f32 %v1385_v2, %v1290_v63  ;;  %v646_v4 = vpop.f32.mrb[3].mxu1  ;;  %v729_v5 = vpop.f32.mrb[5].mxu0  ;;  %v652_v16 = vadd.f32 %v1376_v1, %v1287_v0  ;;  %v133_v2 = vshrl.u32 %v132_v20, 7 }
 0x8ba   :  { %v647_v8 = vadd.f32 %v1287_v0, %v646_v4  ;;  %v730_v9 = vadd.f32 %v1290_v63, %v729_v5 }
 0x8bb   :  { %v1133_v4 = vsub.s32 0, %v133_v2  ;;  %vm1150_vm7 = vcmp.eq.s32.totalorder %v133_v2, 0  ;;  %vm1161_vm9 = vcmp.eq.s32.totalorder %v133_v2, 1 }
 0x8bc   :  { %v1443_v10 = vpack.c.bf16 %v735_v3, %v730_v9  ;;  %1399 = vmatprep.mubr.msk.f32.mxu0 %vm135_vm3, %v647_v8  ;;  %v1126_v3 = vld [vmem:[#allocation2 + $0xd7] sm:$0x1]  ;;  %v1128_v9 = vld [vmem:[#allocation2 + $0xd8] sm:$0x1] }
 0x8be   :  { %v1394_v12 = vpop.f32.mrb[4].mxu1  ;;  %1445 = vmatprep.subr.msk.bf16.mxu0 %vm1444_vm15, %v1443_v10 }
 0x8bf   :  { %v818_v6 = vadd.f32 %v1394_v12, %v1293_v11  ;;  %v812_v13 = vpop.f32.mrb[5].mxu1  ;;  %1448 = vmatpush3.bf16.xpose.msk.msra.mxu0 %vm1444_vm15, %v1443_v10 }
 0x8c0   :  { %v813_v14 = vadd.f32 %v1293_v11, %v812_v13  ;;  %1459 = vmatprep.subr.bf16.mxu0 %v1544_v33 }
 0x8c2   :  { %v1449_v15 = vpack.c.bf16 %v818_v6, %v813_v14 }
 0x8c4   :  { %1450 = vmatprep.subr.bf16.mxu1 %v1449_v15 }
 0x8c5   :  { %1452 = vmatpush3.bf16.msra.mxu1 %v1449_v15 }
 0x8c6   :  { %1400 = vmatmul.mubr.msk.f32.vlgmr.msra.gmra.mrb[6].mxu0 %vm135_vm3, %v652_v16  ;;  %1455 = vmatprep.subr.msk.bf16.mxu1 %vm1626_vm13, %v1453_v19 }
 0x8c7   :  { %1422 = vmatprep.mubr.msk.f32.mxu0 %vm1545_vm6, %v1546_v35  ;;  %1461 = vmatpush3.bf16.msra.mxu0 %v1460_v34  ;;  %v1306_v34 = vld [vmem:[#allocation2 + $0xd9] ss:$0 sm:$0xff] }
 0x8c8   :  { %1420 = vmatprep.subr.mxu0 %v1546_v35 }
 0x8cb   :  { %1421 = vmatpush3.msra.mxu0 %v1167_v36 }
 0x999   :  { %v1401_v22 = vpop.f32.mrb[6].mxu0 }
 0x99a   :  { %v923_v23 = vmul.f32 0.125, %v1401_v22  ;;  %v899_v24 = vpop.f32.mrb[7].mxu0 }
 0x99b   :  { %v922_v25 = vmul.f32 0.125, %v899_v24 }
 0x99c   :  { %v925_v29 = vsel %vm917_vm4, %v923_v23, 0.0 }
 0x99d   :  { %v924_v27 = vsel %vm911_vm2, %v922_v25, 0.0 }
 0x99e   :  { %1406 = vmatprep.mubr.msk.f32.mxu1 %vm926_vm5, %v924_v27 }
 0x99f   :  { %1407 = vmatmul.mubr.msk.f32.vlgmr.msra.gmra.mrb[6].mxu1 %vm926_vm5, %v925_v29 }
 0x9a0   :  { %1458 = vmatpush3.bf16.msk.msra.mxu1 %vm1626_vm13, %v1453_v19 }
 0xa72   :  { %v1408_v7 = vpop.f32.mrb[6].mxu1 }
 0xa73   :  { %v999_v30 = vpop.f32.mrb[7].mxu1 }
 0xa74   :  { %1413 = vmatprep.mubr.msk.f32.mxu1 %vm135_vm3, %v999_v30 }
 0xa75   :  { %1414 = vmatmul.mubr.msk.f32.vlgmr.msra.gmra.mrb[8].mxu1 %vm135_vm3, %v1408_v7 }
 0xb48   :  { %v1415_v37 = vpop.f32.mrb[8].mxu1 }
 0xb49   :  { %v1096_v38 = vadd.f32 %v1415_v37, %v1302_v28  ;;  %v1090_v39 = vpop.f32.mrb[9].mxu1 }
 0xb4a   :  { %v1091_v40 = vadd.f32 %v1302_v28, %v1090_v39 }
 0xb4b   :  { %v1100_v41 = vsel %vm362_vm8, %v1096_v38, 0.0  ;;  %v1110_v42 = vmul.f32 %v1096_v38, %v1096_v38 }
 0xb4c   :  { %v1099_v43 = vsel %vm362_vm8, %v1091_v40, 0.0  ;;  %v1109_v44 = vmul.f32 %v1091_v40, %v1091_v40 }
 0xb4d   :  { %v1112_v45 = vsel %vm362_vm8, %v1110_v42, 0.0  ;;  %v1101_v46 = vadd.f32 %v1100_v41, %v1099_v43  ;;  %v1547_v42 = vmov 0   ;;  %v1309_v43 = vld [vmem:[#allocation2 + $0xdb] ss:$0 sm:$0xff] }
 0xb4e   :  { %v1111_v47 = vsel %vm362_vm8, %v1109_v44, 0.0  ;;  %1499 = vset.pattern.permute.xlu1 %v1547_v42  ;;  %1500 = vset.pattern.permute.xlu0 %v1547_v42 }
 0xb4f   :  { %v1102_v48 = vrot.slane %v1101_v46, 4  ;;  %v1113_v49 = vadd.f32 %v1112_v45, %v1111_v47 }
 0xb51   :  { %v1103_v50 = vadd.f32 %v1102_v48, %v1101_v46  ;;  %v1114_v51 = vrot.slane %v1113_v49, 4 }
 0xb53   :  { %v1104_v52 = vrot.slane %v1103_v50, 2  ;;  %v1115_v53 = vadd.f32 %v1114_v51, %v1113_v49 }
 0xb55   :  { %v1105_v54 = vadd.f32 %v1104_v52, %v1103_v50  ;;  %v1116_v55 = vrot.slane %v1115_v53, 2 }
 0xb57   :  { %v1106_v56 = vrot.slane %v1105_v54, 1  ;;  %v1117_v57 = vadd.f32 %v1116_v55, %v1115_v53 }
 0xb59   :  { %v1107_v26 = vadd.f32 %v1106_v56, %v1105_v54  ;;  %v1118_v58 = vrot.slane %v1117_v57, 1 }
 0xb5b   :  { %v1108_v59 = vmul.f32 0.0625, %v1107_v26  ;;  %v1119_v60 = vadd.f32 %v1118_v58, %v1117_v57 }
 0xb5d   :  { %v1120_v61 = vmul.f32 0.0625, %v1119_v60  ;;  %v1121_v62 = vmul.f32 %v1108_v59, %v1108_v59 }
 0xb5f   :  { %v1122_v63 = vsub.f32 %v1120_v61, %v1121_v62 }
 0xb61   :  { %v1123_v0 = vmax.f32 %v1122_v63, 0.0 }
 0xb63   :  { %v1124_v1 = vadd.f32 1e-05, %v1123_v0 }
 0xb65   :  { %1509 = vrsqrt.f32 %v1124_v1 }
 0xb6f   :  { %v1510_v5 = vpop.eup %1509 }
 0xb70   :  { %v1127_v8 = vmul.f32 %v1510_v5, %v1126_v3 }
 0xb72   :  { %v1129_v10 = vmul.f32 %v1127_v8, %v1108_v59  ;;  %v1134_v11 = vrot.slane %v1127_v8, %v1133_v4 }
 0xb74   :  { %v1130_v12 = vsub.f32 %v1128_v9, %v1129_v10  ;;  %v1135_v6 = vmul.f32 %v1134_v11, %v1091_v40  ;;  %v1136_v13 = vmul.f32 %v1134_v11, %v1096_v38  ;;  %v1308_v38 = vld [vmem:[#allocation2 + $0xda] ss:$0 sm:$0xff] }
 0xb76   :  { %v1140_v14 = vrot.slane %v1130_v12, %v1133_v4 }
 0xb78   :  { %v1141_v15 = vadd.f32 %v1140_v14, %v1135_v6  ;;  %v1142_v16 = vadd.f32 %v1140_v14, %v1136_v13 }
 0xb7a   :  { %v1143_v17 = vsel %vm362_vm8, %v1141_v15, -inf  ;;  %v1154_v18 = vsel %vm362_vm8, %v1142_v16, -inf }
 0xb7b   :  { %v1144_v19 = vrot.slane %v1143_v17, 4  ;;  %v1155_v21 = vrot.slane %v1154_v18, 4 }
 0xb7d   :  { %v1145_v20 = vmax.f32 %v1143_v17, %v1144_v19  ;;  %v1156_v22 = vmax.f32 %v1154_v18, %v1155_v21 }
 0xb7f   :  { %v1146_v23 = vrot.slane %v1145_v20, 2  ;;  %v1157_v24 = vrot.slane %v1156_v22, 2 }
 0xb81   :  { %v1147_v25 = vmax.f32 %v1145_v20, %v1146_v23  ;;  %v1158_v27 = vmax.f32 %v1156_v22, %v1157_v24 }
 0xb83   :  { %v1148_v29 = vrot.slane %v1147_v25, 1  ;;  %v1159_v7 = vrot.slane %v1158_v27, 1 }
 0xb85   :  { %v1149_v30 = vmax.f32 %v1147_v25, %v1148_v29  ;;  %v1160_v31 = vmax.f32 %v1158_v27, %v1159_v7 }
 0xb87   :  { %v1153_v32 = vsel %vm1150_vm7, %v1149_v30, 0.0 }
 0xb88   :  { %v1164_v33 = vsel %vm1161_vm9, %v1160_v31, %v1153_v32 }
 0xb89   :  { %1423 = vmatmul.mubr.msk.f32.vlgmr.msra.gmra.mrb[8].mxu0 %vm362_vm8, %v1164_v33 }
 0xc5c   :  { %v1242_v35 = vpop.f32.mrb[8].mxu0 }
 0xc5d   :  { %v1243_v36 = vadd.f32 %v1306_v34, %v1242_v35  ;;  %v1424_v28 = vpop.f32.mrb[9].mxu0 }
 0xc5f   :  { %vm1246_vm10 = vcmp.ge.f32.partialorder %v1243_v36, 0.0  ;;  %v1247_v37 = vmul.f32 0.1, %v1243_v36 }
 0xc61   :  { %v1248_v39 = vsel %vm1246_vm10, %v1243_v36, %v1247_v37 }
 0xc62   :  { %v1254_v40 = vmul.f32 %v1308_v38, %v1248_v39 }
 0xc64   :  { %v1255_v41 = vsel %vm135_vm3, %v1254_v40, 0.0 }
 0xc65   :  { %1256 = vadd.xlane.f32.xlu1 %v1255_v41 }
 0xcf2   :  { %v1257_v44 = vpop.xlane.xlu1 %1256 }
 0xcf3   :  { %v1263_v45 = vadd.f32 %v1309_v43, %v1257_v44 }
 0xcf5   :  { %1266 = vperm.xlu1 %1499, %v1263_v45  }
 0xd74   :  { %v1267_v46 = vpop.permute.xlu1 %1266 }
 0xd75   :  { %1269 = vst [vmem:[%s1668_s2] sm:$0xff] %v1267_v46 }
 0xd76   :  { %1274 = vsyncpa [#allocation3], 1 }

</bundles_post_ra>
